<compile_context>
chip_gen: v5e
topology: v5e:2x2
jax: 0.10.0
libtpu: 0.0.40
codegen_flags: <defaults>
</compile_context>

<pallas_src>
import functools

import jax
import jax.numpy as jnp
from jax import lax
from jax.experimental import pallas as pl
from jax.experimental.pallas import tpu as pltpu


def _round_up(x, m):
    return (x + m - 1) // m * m


def _skip_gram_kernel(v_ref, w1_ref, w2_ref, w4_ref, w5_ref,
                      y1_ref, y2_ref, y4_ref, y5_ref,
                      acc1, acc2, acc4, acc5):
    """One grid step: (tm, tk) activations x four (tn, tk) weight tiles.

    Weights are in nn.Linear (out, in) layout; we contract dim 1 of the
    activations with dim 1 of the weights (== v @ W.T) so no transpose is ever
    materialized. Accumulation is f32 in VMEM scratch across the K grid axis.
    """
    k = pl.program_id(2)

    @pl.when(k == 0)
    def _init():
        acc1[...] = jnp.zeros_like(acc1)
        acc2[...] = jnp.zeros_like(acc2)
        acc4[...] = jnp.zeros_like(acc4)
        acc5[...] = jnp.zeros_like(acc5)

    v = v_ref[...]
    dn = (((1,), (1,)), ((), ()))  # contract v dim 1 with w dim 1  (v @ w.T)
    acc1[...] += lax.dot_general(v, w1_ref[...], dn,
                                 preferred_element_type=jnp.float32)
    acc2[...] += lax.dot_general(v, w2_ref[...], dn,
                                 preferred_element_type=jnp.float32)
    acc4[...] += lax.dot_general(v, w4_ref[...], dn,
                                 preferred_element_type=jnp.float32)
    acc5[...] += lax.dot_general(v, w5_ref[...], dn,
                                 preferred_element_type=jnp.float32)

    @pl.when(k == pl.num_programs(2) - 1)
    def _flush():
        y1_ref[...] = acc1[...].astype(y1_ref.dtype)
        y2_ref[...] = acc2[...].astype(y2_ref.dtype)
        y4_ref[...] = acc4[...].astype(y4_ref.dtype)
        y5_ref[...] = acc5[...].astype(y5_ref.dtype)


@functools.partial(jax.jit, static_argnames=("tm", "tn", "tk"))
def skip_gram_forward(x3, codebook, w1, w2, w4, w5, *,
                      tm=256, tn=256, tk=512):
    """Forward pass of Skip_Gram.

    x3:        (B, S) int32 token ids
    codebook:  (voc_num, voc_dim) float32 embedding table
    wX:        (voc_num, voc_num) float32 nn.Linear weights in (out, in) layout
    returns:   tuple of 4 arrays, each (B, S, voc_num)
    """
    B, S = x3.shape
    voc_num, voc_dim = codebook.shape
    assert voc_dim == voc_num, (
        "Linear(voc_num, voc_num) applied to voc_dim embeddings requires "
        "voc_dim == voc_num (as in the original module)")

    # Embedding lookup (row gather) — glue in plain JAX; matmul hot path is Pallas.
    v3 = jnp.take(codebook, x3.reshape(-1), axis=0)  # (M, K) f32
    M, K = v3.shape
    N = voc_num

    # --- tile selection -----------------------------------------------------
    # Last two dims of every block must be multiples of (8, 128) or the full
    # array extent; fall back to the full extent when the target tile does not
    # divide the dimension (fine at demo sizes; realistic vocabs should be
    # padded to 128/256 multiples outside this function).
    Mp = _round_up(M, 8)
    tm = min(tm, Mp)
    Mp = _round_up(Mp, tm)
    if Mp != M:
        v3 = jnp.pad(v3, ((0, Mp - M), (0, 0)))

    tn = min(tn, N)
    if N % tn:
        tn = N
    tk = min(tk, K)
    if K % tk:
        tk = K

    grid = (Mp // tm, N // tn, K // tk)

    act_spec = pl.BlockSpec((tm, tk), lambda i, j, k: (i, k))
    wgt_spec = pl.BlockSpec((tn, tk), lambda i, j, k: (j, k))   # (out, in) layout
    out_spec = pl.BlockSpec((tm, tn), lambda i, j, k: (i, j))
    out_sd = jax.ShapeDtypeStruct((Mp, N), jnp.float32)

    cost = pl.CostEstimate(
        flops=4 * 2 * Mp * N * K,
        transcendentals=0,
        bytes_accessed=(Mp * K + 4 * N * K + 4 * Mp * N) * 4,
    )

    y1, y2, y4, y5 = pl.pallas_call(
        _skip_gram_kernel,
        out_shape=(out_sd, out_sd, out_sd, out_sd),
        grid_spec=pltpu.PrefetchScalarGridSpec(
            num_scalar_prefetch=0,
            grid=grid,
            in_specs=[act_spec, wgt_spec, wgt_spec, wgt_spec, wgt_spec],
            out_specs=[out_spec, out_spec, out_spec, out_spec],
            scratch_shapes=[pltpu.VMEM((tm, tn), jnp.float32)] * 4,
        ),
        compiler_params=pltpu.CompilerParams(
            dimension_semantics=("parallel", "parallel", "arbitrary"),
            vmem_limit_bytes=32 * 1024 * 1024,
        ),
        cost_estimate=cost,
    )(v3, w1, w2, w4, w5)

    shape3 = (B, S, N)
    return (y1[:M].reshape(shape3), y2[:M].reshape(shape3),
            y4[:M].reshape(shape3), y5[:M].reshape(shape3))


if __name__ == "__main__":
    voc_num = 128
    voc_dim = 128        # must equal voc_num (see shape analysis above)
    B, S = 2, 8

    key = jax.random.PRNGKey(0)
    k_emb, k1, k2, k4, k5, k_idx = jax.random.split(key, 6)

    # Deterministic synthetic parameters (shapes match the nn.Module __init__).
    codebook = jax.random.normal(k_emb, (voc_num, voc_dim), dtype=jnp.float32)
    w1 = jax.random.normal(k1, (voc_num, voc_num), dtype=jnp.float32) * 0.05
    w2 = jax.random.normal(k2, (voc_num, voc_num), dtype=jnp.float32) * 0.05
    w4 = jax.random.normal(k4, (voc_num, voc_num), dtype=jnp.float32) * 0.05
    w5 = jax.random.normal(k5, (voc_num, voc_num), dtype=jnp.float32) * 0.05

    x3 = jax.random.randint(k_idx, (B, S), 0, voc_num, dtype=jnp.int32)

    y1, y2, y4, y5 = skip_gram_forward(x3, codebook, w1, w2, w4, w5)
    jax.block_until_ready((y1, y2, y4, y5))

    # Reference check against plain JAX (same math as the PyTorch forward).
    v3 = jnp.take(codebook, x3.reshape(-1), axis=0).reshape(B, S, voc_dim)
    refs = tuple(jnp.einsum("bsd,od->bso", v3, w,
                            preferred_element_type=jnp.float32)
                 for w in (w1, w2, w4, w5))
    for got, ref in zip((y1, y2, y4, y5), refs):
        assert got.shape == (B, S, voc_num)
        assert jnp.allclose(got, ref, atol=1e-4, rtol=1e-4)

    print("KERNEL_OK")
</pallas_src>

<mosaic_0001>
module attributes {stable_mosaic.version = 11 : i64} {
  func.func @_skip_gram_kernel(%arg0: i32, %arg1: i32, %arg2: i32, %arg3: memref<16x128xf32, #tpu.memory_space<vmem>>, %arg4: memref<128x128xf32, #tpu.memory_space<vmem>>, %arg5: memref<128x128xf32, #tpu.memory_space<vmem>>, %arg6: memref<128x128xf32, #tpu.memory_space<vmem>>, %arg7: memref<128x128xf32, #tpu.memory_space<vmem>>, %arg8: memref<16x128xf32, #tpu.memory_space<vmem>>, %arg9: memref<16x128xf32, #tpu.memory_space<vmem>>, %arg10: memref<16x128xf32, #tpu.memory_space<vmem>>, %arg11: memref<16x128xf32, #tpu.memory_space<vmem>>, %arg12: memref<16x128xf32, #tpu.memory_space<vmem>>, %arg13: memref<16x128xf32, #tpu.memory_space<vmem>>, %arg14: memref<16x128xf32, #tpu.memory_space<vmem>>, %arg15: memref<16x128xf32, #tpu.memory_space<vmem>>) attributes {dimension_semantics = [#tpu.dimension_semantics<parallel>, #tpu.dimension_semantics<parallel>, #tpu.dimension_semantics<arbitrary>], iteration_bounds = array<i64: 1, 1, 1>, scalar_prefetch = 0 : i64, scratch_operands = 4 : i64, tpu.core_type = #tpu.core_type<tc>, window_params = [{transform_indices = @transform_0, window_bounds = array<i64: 16, 128>}, {transform_indices = @transform_1, window_bounds = array<i64: 128, 128>}, {transform_indices = @transform_2, window_bounds = array<i64: 128, 128>}, {transform_indices = @transform_3, window_bounds = array<i64: 128, 128>}, {transform_indices = @transform_4, window_bounds = array<i64: 128, 128>}, {transform_indices = @transform_5, window_bounds = array<i64: 16, 128>}, {transform_indices = @transform_6, window_bounds = array<i64: 16, 128>}, {transform_indices = @transform_7, window_bounds = array<i64: 16, 128>}, {transform_indices = @transform_8, window_bounds = array<i64: 16, 128>}]} {
    %c0_i32 = arith.constant 0 : i32
    %0 = arith.cmpi eq, %arg2, %c0_i32 : i32
    %1 = arith.extui %0 : i1 to i32
    %c0_i32_0 = arith.constant 0 : i32
    %2 = arith.cmpi ne, %1, %c0_i32_0 : i32
    scf.if %2 {
      %cst_31 = arith.constant 0.000000e+00 : f32
      %27 = vector.broadcast %cst_31 : f32 to vector<16x128xf32>
      %c0_32 = arith.constant 0 : index
      %c0_33 = arith.constant 0 : index
      %28 = vector.load %arg12[%c0_32, %c0_33] : memref<16x128xf32, #tpu.memory_space<vmem>>, vector<16x128xf32>
      tpu.vector_store %arg12[%c0_32, %c0_33], %27 {strides = array<i32>} : memref<16x128xf32, #tpu.memory_space<vmem>>, vector<16x128xf32>,
      %cst_34 = arith.constant 0.000000e+00 : f32
      %29 = vector.broadcast %cst_34 : f32 to vector<16x128xf32>
      %c0_35 = arith.constant 0 : index
      %c0_36 = arith.constant 0 : index
      %30 = vector.load %arg13[%c0_35, %c0_36] : memref<16x128xf32, #tpu.memory_space<vmem>>, vector<16x128xf32>
      tpu.vector_store %arg13[%c0_35, %c0_36], %29 {strides = array<i32>} : memref<16x128xf32, #tpu.memory_space<vmem>>, vector<16x128xf32>,
      %cst_37 = arith.constant 0.000000e+00 : f32
      %31 = vector.broadcast %cst_37 : f32 to vector<16x128xf32>
      %c0_38 = arith.constant 0 : index
      %c0_39 = arith.constant 0 : index
      %32 = vector.load %arg14[%c0_38, %c0_39] : memref<16x128xf32, #tpu.memory_space<vmem>>, vector<16x128xf32>
      tpu.vector_store %arg14[%c0_38, %c0_39], %31 {strides = array<i32>} : memref<16x128xf32, #tpu.memory_space<vmem>>, vector<16x128xf32>,
      %cst_40 = arith.constant 0.000000e+00 : f32
      %33 = vector.broadcast %cst_40 : f32 to vector<16x128xf32>
      %c0_41 = arith.constant 0 : index
      %c0_42 = arith.constant 0 : index
      %34 = vector.load %arg15[%c0_41, %c0_42] : memref<16x128xf32, #tpu.memory_space<vmem>>, vector<16x128xf32>
      tpu.vector_store %arg15[%c0_41, %c0_42], %33 {strides = array<i32>} : memref<16x128xf32, #tpu.memory_space<vmem>>, vector<16x128xf32>,
    } else {
    }
    %c0 = arith.constant 0 : index
    %c0_1 = arith.constant 0 : index
    %3 = vector.load %arg3[%c0, %c0_1] : memref<16x128xf32, #tpu.memory_space<vmem>>, vector<16x128xf32>
    %c0_2 = arith.constant 0 : index
    %c0_3 = arith.constant 0 : index
    %4 = vector.load %arg12[%c0_2, %c0_3] : memref<16x128xf32, #tpu.memory_space<vmem>>, vector<16x128xf32>
    %c0_4 = arith.constant 0 : index
    %c0_5 = arith.constant 0 : index
    %5 = vector.load %arg4[%c0_4, %c0_5] : memref<128x128xf32, #tpu.memory_space<vmem>>, vector<128x128xf32>
    %cst = arith.constant dense<0.000000e+00> : vector<16x128xf32>
    %6 = tpu.matmul %3, %5, %cst {dimension_numbers = #tpu.dot_dimension_numbers<[1], [1], [0], [0], [0, 0, 1, 0], [], []>} : vector<16x128xf32>, vector<128x128xf32>, vector<16x128xf32> -> vector<16x128xf32>
    %7 = arith.addf %4, %6 : vector<16x128xf32>
    %c0_6 = arith.constant 0 : index
    %c0_7 = arith.constant 0 : index
    %8 = vector.load %arg12[%c0_6, %c0_7] : memref<16x128xf32, #tpu.memory_space<vmem>>, vector<16x128xf32>
    tpu.vector_store %arg12[%c0_6, %c0_7], %7 {strides = array<i32>} : memref<16x128xf32, #tpu.memory_space<vmem>>, vector<16x128xf32>,
    %c0_8 = arith.constant 0 : index
    %c0_9 = arith.constant 0 : index
    %9 = vector.load %arg13[%c0_8, %c0_9] : memref<16x128xf32, #tpu.memory_space<vmem>>, vector<16x128xf32>
    %c0_10 = arith.constant 0 : index
    %c0_11 = arith.constant 0 : index
    %10 = vector.load %arg5[%c0_10, %c0_11] : memref<128x128xf32, #tpu.memory_space<vmem>>, vector<128x128xf32>
    %cst_12 = arith.constant dense<0.000000e+00> : vector<16x128xf32>
    %11 = tpu.matmul %3, %10, %cst_12 {dimension_numbers = #tpu.dot_dimension_numbers<[1], [1], [0], [0], [0, 0, 1, 0], [], []>} : vector<16x128xf32>, vector<128x128xf32>, vector<16x128xf32> -> vector<16x128xf32>
    %12 = arith.addf %9, %11 : vector<16x128xf32>
    %c0_13 = arith.constant 0 : index
    %c0_14 = arith.constant 0 : index
    %13 = vector.load %arg13[%c0_13, %c0_14] : memref<16x128xf32, #tpu.memory_space<vmem>>, vector<16x128xf32>
    tpu.vector_store %arg13[%c0_13, %c0_14], %12 {strides = array<i32>} : memref<16x128xf32, #tpu.memory_space<vmem>>, vector<16x128xf32>,
    %c0_15 = arith.constant 0 : index
    %c0_16 = arith.constant 0 : index
    %14 = vector.load %arg14[%c0_15, %c0_16] : memref<16x128xf32, #tpu.memory_space<vmem>>, vector<16x128xf32>
    %c0_17 = arith.constant 0 : index
    %c0_18 = arith.constant 0 : index
    %15 = vector.load %arg6[%c0_17, %c0_18] : memref<128x128xf32, #tpu.memory_space<vmem>>, vector<128x128xf32>
    %cst_19 = arith.constant dense<0.000000e+00> : vector<16x128xf32>
    %16 = tpu.matmul %3, %15, %cst_19 {dimension_numbers = #tpu.dot_dimension_numbers<[1], [1], [0], [0], [0, 0, 1, 0], [], []>} : vector<16x128xf32>, vector<128x128xf32>, vector<16x128xf32> -> vector<16x128xf32>
    %17 = arith.addf %14, %16 : vector<16x128xf32>
    %c0_20 = arith.constant 0 : index
    %c0_21 = arith.constant 0 : index
    %18 = vector.load %arg14[%c0_20, %c0_21] : memref<16x128xf32, #tpu.memory_space<vmem>>, vector<16x128xf32>
    tpu.vector_store %arg14[%c0_20, %c0_21], %17 {strides = array<i32>} : memref<16x128xf32, #tpu.memory_space<vmem>>, vector<16x128xf32>,
    %c0_22 = arith.constant 0 : index
    %c0_23 = arith.constant 0 : index
    %19 = vector.load %arg15[%c0_22, %c0_23] : memref<16x128xf32, #tpu.memory_space<vmem>>, vector<16x128xf32>
    %c0_24 = arith.constant 0 : index
    %c0_25 = arith.constant 0 : index
    %20 = vector.load %arg7[%c0_24, %c0_25] : memref<128x128xf32, #tpu.memory_space<vmem>>, vector<128x128xf32>
    %cst_26 = arith.constant dense<0.000000e+00> : vector<16x128xf32>
    %21 = tpu.matmul %3, %20, %cst_26 {dimension_numbers = #tpu.dot_dimension_numbers<[1], [1], [0], [0], [0, 0, 1, 0], [], []>} : vector<16x128xf32>, vector<128x128xf32>, vector<16x128xf32> -> vector<16x128xf32>
    %22 = arith.addf %19, %21 : vector<16x128xf32>
    %c0_27 = arith.constant 0 : index
    %c0_28 = arith.constant 0 : index
    %23 = vector.load %arg15[%c0_27, %c0_28] : memref<16x128xf32, #tpu.memory_space<vmem>>, vector<16x128xf32>
    tpu.vector_store %arg15[%c0_27, %c0_28], %22 {strides = array<i32>} : memref<16x128xf32, #tpu.memory_space<vmem>>, vector<16x128xf32>,
    %c0_i32_29 = arith.constant 0 : i32
    %24 = arith.cmpi eq, %arg2, %c0_i32_29 : i32
    %25 = arith.extui %24 : i1 to i32
    %c0_i32_30 = arith.constant 0 : i32
    %26 = arith.cmpi ne, %25, %c0_i32_30 : i32
    scf.if %26 {
      %c0_31 = arith.constant 0 : index
      %c0_32 = arith.constant 0 : index
      %27 = vector.load %arg12[%c0_31, %c0_32] : memref<16x128xf32, #tpu.memory_space<vmem>>, vector<16x128xf32>
      %c0_33 = arith.constant 0 : index
      %c0_34 = arith.constant 0 : index
      %28 = vector.load %arg8[%c0_33, %c0_34] : memref<16x128xf32, #tpu.memory_space<vmem>>, vector<16x128xf32>
      tpu.vector_store %arg8[%c0_33, %c0_34], %27 {strides = array<i32>} : memref<16x128xf32, #tpu.memory_space<vmem>>, vector<16x128xf32>,
      %c0_35 = arith.constant 0 : index
      %c0_36 = arith.constant 0 : index
      %29 = vector.load %arg13[%c0_35, %c0_36] : memref<16x128xf32, #tpu.memory_space<vmem>>, vector<16x128xf32>
      %c0_37 = arith.constant 0 : index
      %c0_38 = arith.constant 0 : index
      %30 = vector.load %arg9[%c0_37, %c0_38] : memref<16x128xf32, #tpu.memory_space<vmem>>, vector<16x128xf32>
      tpu.vector_store %arg9[%c0_37, %c0_38], %29 {strides = array<i32>} : memref<16x128xf32, #tpu.memory_space<vmem>>, vector<16x128xf32>,
      %c0_39 = arith.constant 0 : index
      %c0_40 = arith.constant 0 : index
      %31 = vector.load %arg14[%c0_39, %c0_40] : memref<16x128xf32, #tpu.memory_space<vmem>>, vector<16x128xf32>
      %c0_41 = arith.constant 0 : index
      %c0_42 = arith.constant 0 : index
      %32 = vector.load %arg10[%c0_41, %c0_42] : memref<16x128xf32, #tpu.memory_space<vmem>>, vector<16x128xf32>
      tpu.vector_store %arg10[%c0_41, %c0_42], %31 {strides = array<i32>} : memref<16x128xf32, #tpu.memory_space<vmem>>, vector<16x128xf32>,
      %c0_43 = arith.constant 0 : index
      %c0_44 = arith.constant 0 : index
      %33 = vector.load %arg15[%c0_43, %c0_44] : memref<16x128xf32, #tpu.memory_space<vmem>>, vector<16x128xf32>
      %c0_45 = arith.constant 0 : index
      %c0_46 = arith.constant 0 : index
      %34 = vector.load %arg11[%c0_45, %c0_46] : memref<16x128xf32, #tpu.memory_space<vmem>>, vector<16x128xf32>
      tpu.vector_store %arg11[%c0_45, %c0_46], %33 {strides = array<i32>} : memref<16x128xf32, #tpu.memory_space<vmem>>, vector<16x128xf32>,
    } else {
    }
    return
  }
  func.func @transform_0(%arg0: i32, %arg1: i32, %arg2: i32) -> (i32, i32) {
    %c0_i32 = arith.constant 0 : i32
    return %arg0, %arg2 : i32, i32
  }
  func.func @transform_1(%arg0: i32, %arg1: i32, %arg2: i32) -> (i32, i32) {
    %c0_i32 = arith.constant 0 : i32
    return %arg1, %arg2 : i32, i32
  }
  func.func @transform_2(%arg0: i32, %arg1: i32, %arg2: i32) -> (i32, i32) {
    %c0_i32 = arith.constant 0 : i32
    return %arg1, %arg2 : i32, i32
  }
  func.func @transform_3(%arg0: i32, %arg1: i32, %arg2: i32) -> (i32, i32) {
    %c0_i32 = arith.constant 0 : i32
    return %arg1, %arg2 : i32, i32
  }
  func.func @transform_4(%arg0: i32, %arg1: i32, %arg2: i32) -> (i32, i32) {
    %c0_i32 = arith.constant 0 : i32
    return %arg1, %arg2 : i32, i32
  }
  func.func @transform_5(%arg0: i32, %arg1: i32, %arg2: i32) -> (i32, i32) {
    %c0_i32 = arith.constant 0 : i32
    return %arg0, %arg1 : i32, i32
  }
  func.func @transform_6(%arg0: i32, %arg1: i32, %arg2: i32) -> (i32, i32) {
    %c0_i32 = arith.constant 0 : i32
    return %arg0, %arg1 : i32, i32
  }
  func.func @transform_7(%arg0: i32, %arg1: i32, %arg2: i32) -> (i32, i32) {
    %c0_i32 = arith.constant 0 : i32
    return %arg0, %arg1 : i32, i32
  }
  func.func @transform_8(%arg0: i32, %arg1: i32, %arg2: i32) -> (i32, i32) {
    %c0_i32 = arith.constant 0 : i32
    return %arg0, %arg1 : i32, i32
  }
}

</mosaic_0001>

<bundles_post_ra>
// kernel: skip_gram_forward.1
= control target key start
LH: loop header
LB: loop body
LE: loop exit
PB: predicated region body
PF: predicated region fallthrough
CT: control target
= control target key end

     0   :  { %14 = vsyncpa [#allocation7], 0  ;;  %s697_s0 = inlined_call_operand.vmem [shape: f32[16,128], index: 0, kind: input, shape index: {}]   ;;  %s698_s1 = inlined_call_operand.vmem [shape: f32[128,128], index: 1, kind: input, shape index: {}]   ;;  %s699_s2 = inlined_call_operand.hbm [shape: f32[128,128], index: 2, kind: input, shape index: {}]   ;;  %s700_s3 = inlined_call_operand.hbm [shape: f32[128,128], index: 3, kind: input, shape index: {}]   ;;  %s701_s4 = inlined_call_operand.hbm [shape: f32[128,128], index: 4, kind: input, shape index: {}]   ;;  %s702_s5 = inlined_call_operand.hbm [shape: f32[16,128], index: 5, kind: output, shape index: {0}]   ;;  %s703_s6 = inlined_call_operand.hbm [shape: f32[16,128], index: 6, kind: output, shape index: {1}]   ;;  %s704_s7 = inlined_call_operand.hbm [shape: f32[16,128], index: 7, kind: output, shape index: {2}]   ;;  %s705_s8 = inlined_call_operand.hbm [shape: f32[16,128], index: 8, kind: output, shape index: {3}]  }
   0x1   :  { %15 = vsyncpa [#allocation10], 0 }
   0x2   :  { %16 = vsyncpa [#allocation8], 0 }
   0x3   :  { %17 = vsyncpa [#allocation14], 0 }
   0x4   :  { %18 = vsyncpa [#allocation17], 0  ;;  %s40_s29 = sshll.u32 %s700_s3, 4  ;;  %s547_s30 = smov [#allocation9]   ;;  %s41_s29 = int_to_ptr.hbm [resolvable:$true] %s40_s29 }
   0x5   :  { %s42_s9 = sshll.u32 %s547_s30, 4  ;;  %s27_s12 = sshll.u32 %s699_s2, 4  ;;  %s43_s9 = int_to_ptr.vmem [resolvable:$true] %s42_s9  ;;  %s28_s12 = int_to_ptr.hbm [resolvable:$true] %s27_s12 }
   0x6   :  { %s548_s13 = smov 128   ;;  %s549_s14 = smov 8  }
   0x7   :  { %48 = dma.hbm_to_vmem [thread:$0]  %s41_s29, 2048, %s43_s9, [#allocation10], %s548_s13, %s548_s13, %s549_s14  }
   0x8   :  { %s550_s15 = smov [#allocation6]   ;;  %s53_s3 = sshll.u32 %s701_s4, 4  ;;  %s54_s3 = int_to_ptr.hbm [resolvable:$true] %s53_s3 }
   0x9   :  { %s29_s16 = sshll.u32 %s550_s15, 4  ;;  %s551_s2 = smov [#allocation11]   ;;  %s30_s16 = int_to_ptr.vmem [resolvable:$true] %s29_s16 }
   0xa   :  { %35 = dma.hbm_to_vmem [thread:$0]  %s28_s12, 2048, %s30_s16, [#allocation7], %s548_s13, %s548_s13, %s549_s14  }
   0xb   :  { %s55_s19 = sshll.u32 %s551_s2, 4  ;;  %s56_s19 = int_to_ptr.vmem [resolvable:$true] %s55_s19 }
   0xc   :  { %61 = dma.hbm_to_vmem [thread:$0]  %s54_s3, 2048, %s56_s19, [#allocation10], %s548_s13, %s548_s13, %s549_s14  }
   0xd   :  { %537 = dma.done.wait [#allocation7], 2048  }
   0xe   :  { %538 = vsyncadd [#allocation7], 4294965248 }
   0xf   :  { %539 = dma.done.wait [#allocation10], 4096  }
  0x10   :  { %540 = vsyncadd [#allocation10], 4294963200  ;;  %v195_v0 = vld [vmem:[#allocation9 + $0x78] sm:$0xff]  ;;  %v194_v4 = vld [vmem:[#allocation9 + $0x70] sm:$0xff]  ;;  %s306_s15 = sshll.u32 %s703_s6, 4  ;;  %s553_s16 = smov [#allocation12]   ;;  %s307_s15 = int_to_ptr.hbm [resolvable:$true] %s306_s15 }
  0x11   :  { %v240_v1 = vld [vmem:[#allocation11 + $0x78] sm:$0xff]  ;;  %196 = vmatpush.xpose.msra.mxu2 %v195_v0  ;;  %v239_v5 = vld [vmem:[#allocation11 + $0x70] sm:$0xff]  ;;  %v193_v8 = vld [vmem:[#allocation9 + $0x68] sm:$0xff]  ;;  %s291_s17 = sshll.u32 %s553_s16, 4  ;;  %s554_s2 = smov [#allocation15]   ;;  %s292_s17 = int_to_ptr.vmem [resolvable:$true] %s291_s17 }
  0x12   :  { %241 = vmatpush.xpose.msra.mxu3 %v240_v1  ;;  %v150_v2 = vld [vmem:[#allocation6 + $0x78] sm:$0xff]  ;;  %v149_v6 = vld [vmem:[#allocation6 + $0x70] sm:$0xff]  ;;  %v238_v9 = vld [vmem:[#allocation11 + $0x68] sm:$0xff]  ;;  %s317_s19 = sshll.u32 %s554_s2, 4  ;;  %s319_s20 = sshll.u32 %s704_s7, 4  ;;  %s318_s19 = int_to_ptr.vmem [resolvable:$true] %s317_s19  ;;  %s320_s20 = int_to_ptr.hbm [resolvable:$true] %s319_s20 }
  0x13   :  { %v105_v3 = vld [vmem:[%s698_s1 + $0x78] sm:$0xff]  ;;  %151 = vmatpush.xpose.msra.mxu1 %v150_v2  ;;  %v104_v7 = vld [vmem:[%s698_s1 + $0x70] sm:$0xff]  ;;  %v148_v10 = vld [vmem:[#allocation6 + $0x68] sm:$0xff]  ;;  %s555_s21 = smov [#allocation16]   ;;  %s332_s24 = sshll.u32 %s705_s8, 4  ;;  %s333_s24 = int_to_ptr.hbm [resolvable:$true] %s332_s24 }
  0x14   :  { %106 = vmatpush.xpose.msra.mxu0 %v105_v3  ;;  %v103_v11 = vld [vmem:[%s698_s1 + $0x68] sm:$0xff]  ;;  %v192_v12 = vld [vmem:[#allocation9 + $0x60] sm:$0xff]  ;;  %v191_v16 = vld [vmem:[#allocation9 + $0x58] sm:$0xff]  ;;  %s330_s22 = sshll.u32 %s555_s21, 4  ;;  %s331_s22 = int_to_ptr.vmem [resolvable:$true] %s330_s22 }
  0x15   :  { %197 = vmatpush.xpose.msra.mxu2 %v194_v4  ;;  %v237_v13 = vld [vmem:[#allocation11 + $0x60] sm:$0xff]  ;;  %v236_v17 = vld [vmem:[#allocation11 + $0x58] sm:$0xff]  ;;  %v190_v20 = vld [vmem:[#allocation9 + $0x50] sm:$0xff] }
  0x16   :  { %242 = vmatpush.xpose.msra.mxu3 %v239_v5  ;;  %v147_v14 = vld [vmem:[#allocation6 + $0x60] sm:$0xff]  ;;  %v146_v18 = vld [vmem:[#allocation6 + $0x58] sm:$0xff]  ;;  %v235_v21 = vld [vmem:[#allocation11 + $0x50] sm:$0xff] }
  0x17   :  { %152 = vmatpush.xpose.msra.mxu1 %v149_v6  ;;  %v102_v15 = vld [vmem:[%s698_s1 + $0x60] sm:$0xff]  ;;  %v101_v19 = vld [vmem:[%s698_s1 + $0x58] sm:$0xff]  ;;  %v145_v22 = vld [vmem:[#allocation6 + $0x50] sm:$0xff] }
  0x18   :  { %107 = vmatpush.xpose.msra.mxu0 %v104_v7  ;;  %v100_v23 = vld [vmem:[%s698_s1 + $0x50] sm:$0xff]  ;;  %v189_v24 = vld [vmem:[#allocation9 + $0x48] sm:$0xff]  ;;  %v188_v28 = vld [vmem:[#allocation9 + $0x40] sm:$0xff] }
  0x19   :  { %198 = vmatpush.xpose.msra.mxu2 %v193_v8  ;;  %v234_v25 = vld [vmem:[#allocation11 + $0x48] sm:$0xff]  ;;  %v233_v29 = vld [vmem:[#allocation11 + $0x40] sm:$0xff]  ;;  %v187_v32 = vld [vmem:[#allocation9 + $0x38] sm:$0xff] }
  0x1a   :  { %243 = vmatpush.xpose.msra.mxu3 %v238_v9  ;;  %v144_v26 = vld [vmem:[#allocation6 + $0x48] sm:$0xff]  ;;  %v143_v30 = vld [vmem:[#allocation6 + $0x40] sm:$0xff]  ;;  %v232_v33 = vld [vmem:[#allocation11 + $0x38] sm:$0xff] }
  0x1b   :  { %153 = vmatpush.xpose.msra.mxu1 %v148_v10  ;;  %v99_v27 = vld [vmem:[%s698_s1 + $0x48] sm:$0xff]  ;;  %v98_v31 = vld [vmem:[%s698_s1 + $0x40] sm:$0xff]  ;;  %v142_v34 = vld [vmem:[#allocation6 + $0x38] sm:$0xff] }
  0x1c   :  { %108 = vmatpush.xpose.msra.mxu0 %v103_v11  ;;  %v97_v35 = vld [vmem:[%s698_s1 + $0x38] sm:$0xff]  ;;  %v186_v36 = vld [vmem:[#allocation9 + $0x30] sm:$0xff]  ;;  %v185_v40 = vld [vmem:[#allocation9 + $0x28] sm:$0xff] }
  0x1d   :  { %199 = vmatpush.xpose.msra.mxu2 %v192_v12  ;;  %v231_v37 = vld [vmem:[#allocation11 + $0x30] sm:$0xff]  ;;  %v230_v41 = vld [vmem:[#allocation11 + $0x28] sm:$0xff]  ;;  %v184_v44 = vld [vmem:[#allocation9 + $0x20] sm:$0xff] }
  0x1e   :  { %244 = vmatpush.xpose.msra.mxu3 %v237_v13  ;;  %v141_v38 = vld [vmem:[#allocation6 + $0x30] sm:$0xff]  ;;  %v140_v42 = vld [vmem:[#allocation6 + $0x28] sm:$0xff]  ;;  %v229_v45 = vld [vmem:[#allocation11 + $0x20] sm:$0xff] }
  0x1f   :  { %154 = vmatpush.xpose.msra.mxu1 %v147_v14  ;;  %v96_v39 = vld [vmem:[%s698_s1 + $0x30] sm:$0xff]  ;;  %v95_v43 = vld [vmem:[%s698_s1 + $0x28] sm:$0xff]  ;;  %v139_v46 = vld [vmem:[#allocation6 + $0x20] sm:$0xff] }
  0x20   :  { %109 = vmatpush.xpose.msra.mxu0 %v102_v15  ;;  %v94_v47 = vld [vmem:[%s698_s1 + $0x20] sm:$0xff]  ;;  %v183_v48 = vld [vmem:[#allocation9 + $0x18] sm:$0xff]  ;;  %v182_v52 = vld [vmem:[#allocation9 + $0x10] sm:$0xff] }
  0x21   :  { %200 = vmatpush.xpose.msra.mxu2 %v191_v16  ;;  %v228_v49 = vld [vmem:[#allocation11 + $0x18] sm:$0xff]  ;;  %v227_v53 = vld [vmem:[#allocation11 + $0x10] sm:$0xff]  ;;  %v181_v56 = vld [vmem:[#allocation9 + $0x8] sm:$0xff] }
  0x22   :  { %245 = vmatpush.xpose.msra.mxu3 %v236_v17  ;;  %v138_v50 = vld [vmem:[#allocation6 + $0x18] sm:$0xff]  ;;  %v137_v54 = vld [vmem:[#allocation6 + $0x10] sm:$0xff]  ;;  %v226_v57 = vld [vmem:[#allocation11 + $0x8] sm:$0xff] }
  0x23   :  { %155 = vmatpush.xpose.msra.mxu1 %v146_v18  ;;  %v93_v51 = vld [vmem:[%s698_s1 + $0x18] sm:$0xff]  ;;  %v92_v55 = vld [vmem:[%s698_s1 + $0x10] sm:$0xff]  ;;  %v136_v58 = vld [vmem:[#allocation6 + $0x8] sm:$0xff] }
  0x24   :  { %110 = vmatpush.xpose.msra.mxu0 %v101_v19  ;;  %v91_v59 = vld [vmem:[%s698_s1 + $0x8] sm:$0xff]  ;;  %v180_v60 = vld [vmem:[#allocation9] sm:$0xff] }
  0x25   :  { %201 = vmatpush.xpose.msra.mxu2 %v190_v20  ;;  %v225_v61 = vld [vmem:[#allocation11] sm:$0xff]  ;;  %v87_v1 = vld [vmem:[%s697_s0 + $0x8] sm:$0xff] }
  0x26   :  { %246 = vmatpush.xpose.msra.mxu3 %v235_v21  ;;  %v135_v62 = vld [vmem:[#allocation6] sm:$0xff] }
  0x27   :  { %156 = vmatpush.xpose.msra.mxu1 %v145_v22  ;;  %v90_v63 = vld [vmem:[%s698_s1] sm:$0xff]  ;;  %s552_s1 = smov [#allocation13]  }
  0x28   :  { %111 = vmatpush.xpose.msra.mxu0 %v100_v23  ;;  %v86_v0 = vld [vmem:[%s697_s0] sm:$0xff]  ;;  %s304_s10 = sshll.u32 %s552_s1, 4  ;;  %s293_s0 = sshll.u32 %s702_s5, 4  ;;  %s305_s10 = int_to_ptr.vmem [resolvable:$true] %s304_s10  ;;  %s294_s0 = int_to_ptr.hbm [resolvable:$true] %s293_s0 }
  0x29   :  { %202 = vmatpush.xpose.msra.mxu2 %v189_v24 }
  0x2a   :  { %247 = vmatpush.xpose.msra.mxu3 %v234_v25 }
  0x2b   :  { %157 = vmatpush.xpose.msra.mxu1 %v144_v26 }
  0x2c   :  { %112 = vmatpush.xpose.msra.mxu0 %v99_v27 }
  0x2d   :  { %203 = vmatpush.xpose.msra.mxu2 %v188_v28 }
  0x2e   :  { %248 = vmatpush.xpose.msra.mxu3 %v233_v29 }
  0x2f   :  { %158 = vmatpush.xpose.msra.mxu1 %v143_v30 }
  0x30   :  { %113 = vmatpush.xpose.msra.mxu0 %v98_v31 }
  0x31   :  { %204 = vmatpush.xpose.msra.mxu2 %v187_v32 }
  0x32   :  { %249 = vmatpush.xpose.msra.mxu3 %v232_v33 }
  0x33   :  { %159 = vmatpush.xpose.msra.mxu1 %v142_v34 }
  0x34   :  { %114 = vmatpush.xpose.msra.mxu0 %v97_v35 }
  0x35   :  { %205 = vmatpush.xpose.msra.mxu2 %v186_v36 }
  0x36   :  { %250 = vmatpush.xpose.msra.mxu3 %v231_v37 }
  0x37   :  { %160 = vmatpush.xpose.msra.mxu1 %v141_v38 }
  0x38   :  { %115 = vmatpush.xpose.msra.mxu0 %v96_v39 }
  0x39   :  { %206 = vmatpush.xpose.msra.mxu2 %v185_v40 }
  0x3a   :  { %251 = vmatpush.xpose.msra.mxu3 %v230_v41 }
  0x3b   :  { %161 = vmatpush.xpose.msra.mxu1 %v140_v42 }
  0x3c   :  { %116 = vmatpush.xpose.msra.mxu0 %v95_v43 }
  0x3d   :  { %207 = vmatpush.xpose.msra.mxu2 %v184_v44 }
  0x3e   :  { %252 = vmatpush.xpose.msra.mxu3 %v229_v45 }
  0x3f   :  { %162 = vmatpush.xpose.msra.mxu1 %v139_v46 }
  0x40   :  { %117 = vmatpush.xpose.msra.mxu0 %v94_v47 }
  0x41   :  { %208 = vmatpush.xpose.msra.mxu2 %v183_v48 }
  0x42   :  { %253 = vmatpush.xpose.msra.mxu3 %v228_v49 }
  0x43   :  { %163 = vmatpush.xpose.msra.mxu1 %v138_v50 }
  0x44   :  { %118 = vmatpush.xpose.msra.mxu0 %v93_v51 }
  0x45   :  { %209 = vmatpush.xpose.msra.mxu2 %v182_v52 }
  0x46   :  { %254 = vmatpush.xpose.msra.mxu3 %v227_v53 }
  0x47   :  { %164 = vmatpush.xpose.msra.mxu1 %v137_v54 }
  0x48   :  { %119 = vmatpush.xpose.msra.mxu0 %v92_v55 }
  0x49   :  { %210 = vmatpush.xpose.msra.mxu2 %v181_v56 }
  0x4a   :  { %255 = vmatpush.xpose.msra.mxu3 %v226_v57 }
  0x4b   :  { %165 = vmatpush.xpose.msra.mxu1 %v136_v58 }
  0x4c   :  { %120 = vmatpush.xpose.msra.mxu0 %v91_v59 }
  0x4d   :  { %211 = vmatpush.xpose.msra.mxu2 %v180_v60 }
  0x4e   :  { %256 = vmatpush.xpose.msra.mxu3 %v225_v61 }
  0x4f   :  { %166 = vmatpush.xpose.msra.mxu1 %v135_v62 }
  0x50   :  { %121 = vmatpush.xpose.msra.mxu0 %v90_v63  ;;  %212 = vmatmul.f32.vlgmr.msra.gmra.mxu2 %v86_v0 }
  0x51   :  { %257 = vmatmul.f32.vlgmr.msra.gmra.mxu3 %v86_v0 }
  0x52   :  { %167 = vmatmul.f32.vlgmr.msra.gmra.mxu1 %v86_v0 }
  0x53   :  { %122 = vmatmul.f32.vlgmr.msra.gmra.mxu0 %v86_v0 }
  0x58   :  { %215 = vmatmul.f32.gmra.mxu2 %v87_v1 }
  0x59   :  { %260 = vmatmul.f32.gmra.mxu3 %v87_v1 }
  0x5a   :  { %170 = vmatmul.f32.gmra.mxu1 %v87_v1 }
  0x5b   :  { %125 = vmatmul.f32.gmra.mxu0 %v87_v1 }
  0xcf   :  { %v168_v2 = vpop.f32.mrf.mxu1 }
  0xd0   :  { %v123_v3 = vpop.f32.mrf.mxu0  ;;  %277 = vst [vmem:[#allocation13] sm:$0xff] %v168_v2 }
  0xd1   :  { %273 = vst [vmem:[#allocation12] sm:$0xff] %v123_v3 }
  0xd3   :  { %v213_v4 = vpop.f32.mrf.mxu2 }
  0xd4   :  { %v258_v5 = vpop.f32.mrf.mxu3  ;;  %281 = vst [vmem:[#allocation15] sm:$0xff] %v213_v4 }
  0xd5   :  { %285 = vst [vmem:[#allocation16] sm:$0xff] %v258_v5 }
  0xd7   :  { %v171_v6 = vpop.f32.mrf.mxu1 }
  0xd8   :  { %v126_v7 = vpop.f32.mrf.mxu0  ;;  %278 = vst [vmem:[#allocation13 + $0x8] sm:$0xff] %v171_v6 }
  0xd9   :  { %274 = vst [vmem:[#allocation12 + $0x8] sm:$0xff] %v126_v7  ;;  %312 = dma.vmem_to_hbm [thread:$0]  %s305_s10, 256, %s307_s15, [#allocation14], %s548_s13, %s548_s13, %s549_s14  }
  0xda   :  { %299 = dma.vmem_to_hbm [thread:$0]  %s292_s17, 256, %s294_s0, [#allocation8], %s548_s13, %s548_s13, %s549_s14  }
  0xdb   :  { %v216_v8 = vpop.f32.mrf.mxu2 }
  0xdc   :  { %v261_v9 = vpop.f32.mrf.mxu3  ;;  %282 = vst [vmem:[#allocation15 + $0x8] sm:$0xff] %v216_v8 }
  0xdd   :  { %286 = vst [vmem:[#allocation16 + $0x8] sm:$0xff] %v261_v9  ;;  %325 = dma.vmem_to_hbm [thread:$0]  %s318_s19, 256, %s320_s20, [#allocation14], %s548_s13, %s548_s13, %s549_s14  }
  0xde   :  { %338 = dma.vmem_to_hbm [thread:$0]  %s331_s22, 256, %s333_s24, [#allocation17], %s548_s13, %s548_s13, %s549_s14  }
  0xdf   :  { %541 = dma.done.wait [#allocation8], 256  }
  0xe0   :  { %542 = vsyncadd [#allocation8], 4294967040 }
  0xe1   :  { %543 = dma.done.wait [#allocation14], 512  }
  0xe2   :  { %544 = vsyncadd [#allocation14], 4294966784 }
  0xe3   :  { %545 = dma.done.wait [#allocation17], 256  }
  0xe4   :  { %546 = vsyncadd [#allocation17], 4294967040 }
  0xe5   :  { %355 = vsyncpa [#allocation7], 1 }
  0xe6   :  { %356 = vsyncpa [#allocation10], 1 }
  0xe7   :  { %357 = vsyncpa [#allocation8], 1 }
  0xe8   :  { %358 = vsyncpa [#allocation14], 1 }
  0xe9   :  { %359 = vsyncpa [#allocation17], 1 }

</bundles_post_ra>
